<compile_context>
chip_gen: v6e
topology: v6e:2x2x1
jax: 0.10.0
libtpu: 0.0.40
codegen_flags: <defaults>
</compile_context>

<pallas_src>
import functools

import jax
import jax.numpy as jnp
from jax.experimental import pallas as pl
from jax.experimental.pallas import tpu as pltpu

_MIB = 1024 * 1024


def _vmem_limit_bytes():
    """Scoped-VMEM budget: ~112 MiB on 128-MiB parts (v5e/v6e), ~48 MiB on v7x."""
    try:
        cap = int(pltpu.get_tpu_info().vmem_capacity_bytes)
    except Exception:
        cap = 64 * _MIB
    return int(max(32 * _MIB, min(cap - 16 * _MIB, 112 * _MIB)))


def _fused_fits(n, vmem_limit):
    # resident bf16 A + a handful of (8,128)-tile-padded f32 [N, <=32] values
    a_bytes = n * n * 2
    inter_bytes = n * 128 * 4 * 6
    return a_bytes + inter_bytes <= vmem_limit - 4 * _MIB


# ----------------------------------------------------------------------------
# Fused single-call kernel (A resident in VMEM)
# ----------------------------------------------------------------------------
def _fused_kernel(a_ref, x_ref, w1_ref, b1_ref, w2_ref, b2_ref, w3_ref, b3_ref,
                  fcw_ref, fcb_ref, choice_ref, value_ref):
    a = a_ref[...]                                       # [N, N] bf16, resident
    # conv1 projection X @ W1 on the VPU (d == 2, far below MXU grain)
    x = x_ref[...]                                       # [N, d] f32
    w1 = w1_ref[...]                                     # [d, 32] f32
    xw1 = x[:, 0:1] * w1[0:1, :]
    for k in range(1, x.shape[1]):
        xw1 = xw1 + x[:, k:k + 1] * w1[k:k + 1, :]       # [N, 32] f32

    # conv1 aggregation: bf16 MXU matmul, f32 accumulation
    h1 = jnp.dot(a, xw1.astype(jnp.bfloat16), preferred_element_type=jnp.float32)
    h1 = jnp.maximum(h1 + b1_ref[...], 0.0)              # [N, 32]

    # conv2
    xw2 = jnp.dot(h1.astype(jnp.bfloat16), w2_ref[...].astype(jnp.bfloat16),
                  preferred_element_type=jnp.float32)
    h2 = jnp.dot(a, xw2.astype(jnp.bfloat16), preferred_element_type=jnp.float32)
    h2 = jnp.maximum(h2 + b2_ref[...], 0.0)              # [N, 16]

    # conv3
    # TODO(synk): on v7x an fp8(e4m3) copy of A would halve the resident
    #             footprint / HBM read again; kept bf16 for v5e/v6e portability.
    xw3 = jnp.dot(h2.astype(jnp.bfloat16), w3_ref[...].astype(jnp.bfloat16),
                  preferred_element_type=jnp.float32)
    c = jnp.dot(a, xw3.astype(jnp.bfloat16), preferred_element_type=jnp.float32)
    c = c + b3_ref[...]                                  # [N, 1]

    # softmax over nodes (exact division: denominator is a single scalar)
    m = jnp.max(c, axis=0, keepdims=True)
    e = jnp.exp(c - m)
    s = jnp.sum(e, axis=0, keepdims=True)
    choice_ref[...] = e / s

    # global_mean_pool (single graph) + Linear(16, 1) on the VPU/XLU
    v = jnp.sum(h2, axis=0, keepdims=True) * (1.0 / h2.shape[0])     # [1, 16]
    value_ref[...] = (jnp.sum(v * fcw_ref[...], axis=-1, keepdims=True)
                      + fcb_ref[...])                                # [1, 1]


def _forward_fused(a_hat, x, params, vmem_limit):
    n = x.shape[0]
    vmem = pl.BlockSpec(memory_space=pltpu.MemorySpace.VMEM)
    choice, value = pl.pallas_call(
        _fused_kernel,
        in_specs=[vmem] * 10,
        out_specs=(vmem, vmem),
        out_shape=(jax.ShapeDtypeStruct((n, 1), jnp.float32),
                   jax.ShapeDtypeStruct((1, 1), jnp.float32)),
        compiler_params=pltpu.CompilerParams(vmem_limit_bytes=vmem_limit),
    )(a_hat, x, params["w1"], params["b1"], params["w2"], params["b2"],
      params["w3"], params["b3"], params["fc_w"], params["fc_b"])
    return choice, value


# ----------------------------------------------------------------------------
# Streaming fallback for large N (A does not fit VMEM)
# ----------------------------------------------------------------------------
def _pick_tm(n, vmem_limit):
    # double-buffered (tm, N) bf16 A blocks cost 2*tm*N*2 bytes; keep them to
    # ~half the scoped budget, leave the rest for resident [N, <=32] operands.
    tm = (vmem_limit // 2) // (4 * n)
    tm = max(128, min(1024, (tm // 128) * 128))
    return min(tm, n)


def _full(shape):
    """BlockSpec for a small array kept fully VMEM-resident across the row grid."""
    return pl.BlockSpec(shape, lambda i: (0,) * len(shape))


def _xw1_kernel(x_ref, w1_ref, xw1_ref):
    # hoisted X @ W1 (computed exactly once per forward, stored bf16)
    x = x_ref[...]
    w1 = w1_ref[...]
    acc = x[:, 0:1] * w1[0:1, :]
    for k in range(1, x.shape[1]):
        acc = acc + x[:, k:k + 1] * w1[k:k + 1, :]
    xw1_ref[...] = acc.astype(jnp.bfloat16)


def _gcn1_kernel(a_ref, xw1_ref, b1_ref, w2_ref, xw2_ref):
    h1 = jnp.dot(a_ref[...], xw1_ref[...], preferred_element_type=jnp.float32)
    h1 = jnp.maximum(h1 + b1_ref[...], 0.0)
    xw2_ref[...] = jnp.dot(
        h1.astype(jnp.bfloat16), w2_ref[...].astype(jnp.bfloat16),
        preferred_element_type=jnp.float32).astype(jnp.bfloat16)


def _gcn2_kernel(a_ref, xw2_ref, b2_ref, w3_ref, h2s_ref, xw3_ref, *, n):
    tm = a_ref.shape[0]
    h2 = jnp.dot(a_ref[...], xw2_ref[...], preferred_element_type=jnp.float32)
    h2 = jnp.maximum(h2 + b2_ref[...], 0.0)                          # [tm, 16]
    # mask rows past N (partial last block) before the pooled partial sum
    row = jax.lax.broadcasted_iota(jnp.int32, (tm, 1), 0)
    h2m = jnp.where(row < (n - pl.program_id(0) * tm), h2, 0.0)
    ps = jnp.sum(h2m, axis=0, keepdims=True)                          # [1, 16]
    first = jax.lax.broadcasted_iota(jnp.int32, (8, h2.shape[1]), 0) == 0
    h2s_ref[...] = jnp.where(first, ps, 0.0)                          # [8, 16]
    xw3_ref[...] = jnp.dot(
        h2.astype(jnp.bfloat16), w3_ref[...].astype(jnp.bfloat16),
        preferred_element_type=jnp.float32).astype(jnp.bfloat16)


def _gcn3_kernel(a_ref, xw3_ref, b3_ref, c_ref):
    c_ref[...] = (jnp.dot(a_ref[...], xw3_ref[...],
                          preferred_element_type=jnp.float32) + b3_ref[...])


def _head_kernel(c_ref, h2s_ref, fcw_ref, fcb_ref, choice_ref, value_ref, *, n):
    c = c_ref[...]                                        # [1, N] lane-dense
    m = jnp.max(c, axis=-1, keepdims=True)
    e = jnp.exp(c - m)
    s = jnp.sum(e, axis=-1, keepdims=True)
    choice_ref[...] = e / s                               # exact normalization
    v = jnp.sum(h2s_ref[...], axis=0, keepdims=True) * (1.0 / n)     # [1, 16]
    value_ref[...] = (jnp.sum(v * fcw_ref[...], axis=-1, keepdims=True)
                      + fcb_ref[...])


def _forward_tiled(a_hat, x, params, vmem_limit):
    n, d = x.shape
    tm = _pick_tm(n, vmem_limit)
    nb = pl.cdiv(n, tm)
    grid = (nb,)
    row_params = pltpu.CompilerParams(
        dimension_semantics=("parallel",),     # megacore split over row blocks
        vmem_limit_bytes=vmem_limit)
    a_spec = pl.BlockSpec((tm, n), lambda i: (i, 0))

    # hoisted XW1 (bf16, computed once)
    xw1 = pl.pallas_call(
        _xw1_kernel,
        grid=grid,
        in_specs=[pl.BlockSpec((tm, d), lambda i: (i, 0)), _full((d, 32))],
        out_specs=pl.BlockSpec((tm, 32), lambda i: (i, 0)),
        out_shape=jax.ShapeDtypeStruct((n, 32), jnp.bfloat16),
        compiler_params=row_params,
    )(x, params["w1"])

    # conv1: A @ XW1 + b1 -> relu -> @ W2 (emitted bf16 for the next pass)
    xw2 = pl.pallas_call(
        _gcn1_kernel,
        grid=grid,
        in_specs=[a_spec, _full((n, 32)), _full((1, 32)), _full((32, 16))],
        out_specs=pl.BlockSpec((tm, 16), lambda i: (i, 0)),
        out_shape=jax.ShapeDtypeStruct((n, 16), jnp.bfloat16),
        compiler_params=row_params,
    )(a_hat, xw1, params["b1"], params["w2"])

    # conv2: A @ XW2 + b2 -> relu -> (per-block pooled partial sums, XW3)
    h2s, xw3 = pl.pallas_call(
        functools.partial(_gcn2_kernel, n=n),
        grid=grid,
        in_specs=[a_spec, _full((n, 16)), _full((1, 16)), _full((16, 1))],
        out_specs=(pl.BlockSpec((8, 16), lambda i: (i, 0)),
                   pl.BlockSpec((tm, 1), lambda i: (i, 0))),
        out_shape=(jax.ShapeDtypeStruct((8 * nb, 16), jnp.float32),
                   jax.ShapeDtypeStruct((n, 1), jnp.bfloat16)),
        compiler_params=row_params,
    )(a_hat, xw2, params["b2"], params["w3"])

    # conv3: c = A @ XW3 + b3
    c = pl.pallas_call(
        _gcn3_kernel,
        grid=grid,
        in_specs=[a_spec, _full((n, 1)), _full((1, 1))],
        out_specs=pl.BlockSpec((tm, 1), lambda i: (i, 0)),
        out_shape=jax.ShapeDtypeStruct((n, 1), jnp.float32),
        compiler_params=row_params,
    )(a_hat, xw3, params["b3"])

    # head: softmax over nodes + pooled partial sums + Linear(16, 1)
    # TODO(synk): could fold the head into conv3 under an 'arbitrary' row axis
    #             to drop one more (tiny) launch; kept separate for clarity.
    vmem = pl.BlockSpec(memory_space=pltpu.MemorySpace.VMEM)
    choice_row, value = pl.pallas_call(
        functools.partial(_head_kernel, n=n),
        in_specs=[vmem] * 4,
        out_specs=(vmem, vmem),
        out_shape=(jax.ShapeDtypeStruct((1, n), jnp.float32),
                   jax.ShapeDtypeStruct((1, 1), jnp.float32)),
        compiler_params=pltpu.CompilerParams(vmem_limit_bytes=vmem_limit),
    )(c.reshape(1, n), h2s, params["fc_w"], params["fc_b"])

    return choice_row.reshape(n, 1), value


# ----------------------------------------------------------------------------
# Public forward
# ----------------------------------------------------------------------------
def gnn_forward(a_hat, x, params):
    """a_hat: [N, N] normalized adjacency (bf16, from build_norm_adj),
    x: [N, d] node features (f32)."""
    if a_hat.dtype != jnp.bfloat16:           # no-op when built correctly
        a_hat = a_hat.astype(jnp.bfloat16)
    n = x.shape[0]
    vmem_limit = _vmem_limit_bytes()
    if _fused_fits(n, vmem_limit):
        return _forward_fused(a_hat, x, params, vmem_limit)
    return _forward_tiled(a_hat, x, params, vmem_limit)


# ----------------------------------------------------------------------------
# Plain-JAX glue: normalized adjacency + deterministic parameter init
# ----------------------------------------------------------------------------
def build_norm_adj(edge_index, num_nodes):
    """Dense D^-1/2 (A + I) D^-1/2 matching PyG GCNConv's gcn_norm
    (A[dst, src] = 1, duplicates coalesced, remaining self-loops added).
    Returned directly in bf16 so the forward pass never re-casts it."""
    src, dst = edge_index[0], edge_index[1]
    a = jnp.zeros((num_nodes, num_nodes), jnp.float32)
    a = a.at[dst, src].add(1.0)
    a = jnp.where(a > 0.0, 1.0, 0.0)                               # coalesce
    a = jnp.maximum(a, jnp.eye(num_nodes, dtype=jnp.float32))      # self-loops
    deg = jnp.sum(a, axis=1)
    dinv = jnp.where(deg > 0, 1.0 / jnp.sqrt(deg), 0.0)
    return (dinv[:, None] * a * dinv[None, :]).astype(jnp.bfloat16)


def init_params(key, d=2):
    ks = jax.random.split(key, 4)

    def glorot(k, shape, fan_in, fan_out):
        lim = jnp.sqrt(6.0 / (fan_in + fan_out))
        return jax.random.uniform(k, shape, jnp.float32, -lim, lim)

    return {
        "w1": glorot(ks[0], (d, 32), d, 32),   "b1": jnp.zeros((1, 32), jnp.float32),
        "w2": glorot(ks[1], (32, 16), 32, 16), "b2": jnp.zeros((1, 16), jnp.float32),
        "w3": glorot(ks[2], (16, 1), 16, 1),   "b3": jnp.zeros((1, 1), jnp.float32),
        # nn.Linear(16, 1): weight [1, 16] kept row-shaped for the VPU head
        "fc_w": glorot(ks[3], (1, 16), 16, 1),
        "fc_b": jnp.zeros((1, 1), jnp.float32),
    }


def _reference_forward(a, x, params):
    """Pure-JAX f32 reference of the PyTorch forward (same dense A)."""
    h1 = jnp.maximum(a @ (x @ params["w1"]) + params["b1"], 0.0)
    h2 = jnp.maximum(a @ (h1 @ params["w2"]) + params["b2"], 0.0)
    c = a @ (h2 @ params["w3"]) + params["b3"]
    choice = jax.nn.softmax(c, axis=0)
    v = jnp.mean(h2, axis=0, keepdims=True)
    value = v @ params["fc_w"].T + params["fc_b"]
    return choice, value


if __name__ == "__main__":
    key = jax.random.PRNGKey(0)
    k_pos, k_edge, k_param = jax.random.split(key, 3)

    num_nodes, d, num_edges = 16, 2, 40

    # graph.pos : [N, d] node coordinates
    pos = jax.random.normal(k_pos, (num_nodes, d), jnp.float32)

    # graph.edge_index : [2, E] int32 (no raw self-loops; gcn_norm adds them)
    e_src = jax.random.randint(k_edge, (num_edges,), 0, num_nodes, jnp.int32)
    e_dst = (e_src + 1 + jax.random.randint(jax.random.fold_in(k_edge, 1),
                                            (num_edges,), 0, num_nodes - 1,
                                            jnp.int32)) % num_nodes
    edge_index = jnp.stack([e_src, e_dst], axis=0)

    a_hat = build_norm_adj(edge_index, num_nodes)      # bf16, built once
    params = init_params(k_param, d=d)

    choice, value = gnn_forward(a_hat, pos, params)
    jax.block_until_ready((choice, value))

    ref_choice, ref_value = _reference_forward(a_hat.astype(jnp.float32), pos, params)

    assert choice.shape == (num_nodes, 1) and value.shape == (1, 1)
    # exact-division softmax -> probabilities sum to 1 at f32 precision
    assert jnp.allclose(jnp.sum(choice), 1.0, atol=1e-5)
    # bf16 MXU inputs -> loose comparison against the f32 reference
    assert jnp.allclose(choice, ref_choice, atol=5e-2)
    assert jnp.allclose(value, ref_value, atol=5e-2)
    assert bool(jnp.all(jnp.isfinite(choice))) and bool(jnp.all(jnp.isfinite(value)))
    print("KERNEL_OK")
</pallas_src>

<mosaic_0001>
module attributes {stable_mosaic.version = 11 : i64} {
  func.func @_fused_kernel(%arg0: memref<16x16xbf16, #tpu.memory_space<vmem>>, %arg1: memref<16x2xf32, #tpu.memory_space<vmem>>, %arg2: memref<2x32xf32, #tpu.memory_space<vmem>>, %arg3: memref<1x32xf32, #tpu.memory_space<vmem>>, %arg4: memref<32x16xf32, #tpu.memory_space<vmem>>, %arg5: memref<1x16xf32, #tpu.memory_space<vmem>>, %arg6: memref<16x1xf32, #tpu.memory_space<vmem>>, %arg7: memref<1x1xf32, #tpu.memory_space<vmem>>, %arg8: memref<1x16xf32, #tpu.memory_space<vmem>>, %arg9: memref<1x1xf32, #tpu.memory_space<vmem>>, %arg10: memref<16x1xf32, #tpu.memory_space<vmem>>, %arg11: memref<1x1xf32, #tpu.memory_space<vmem>>) attributes {dimension_semantics = [], scalar_prefetch = 0 : i64, scratch_operands = 0 : i64, tpu.core_type = #tpu.core_type<tc>} {
    %c0 = arith.constant 0 : index
    %c0_0 = arith.constant 0 : index
    %0 = vector.load %arg0[%c0, %c0_0] : memref<16x16xbf16, #tpu.memory_space<vmem>>, vector<16x16xbf16>
    %c0_1 = arith.constant 0 : index
    %c0_2 = arith.constant 0 : index
    %1 = vector.load %arg1[%c0_1, %c0_2] : memref<16x2xf32, #tpu.memory_space<vmem>>, vector<16x2xf32>
    %c0_3 = arith.constant 0 : index
    %c0_4 = arith.constant 0 : index
    %2 = vector.load %arg2[%c0_3, %c0_4] : memref<2x32xf32, #tpu.memory_space<vmem>>, vector<2x32xf32>
    %3 = vector.extract_strided_slice %1 {offsets = [0, 0], sizes = [16, 1], strides = [1, 1]} : vector<16x2xf32> to vector<16x1xf32>
    %4 = vector.extract_strided_slice %2 {offsets = [0, 0], sizes = [1, 32], strides = [1, 1]} : vector<2x32xf32> to vector<1x32xf32>
    %5 = vector.broadcast %3 : vector<16x1xf32> to vector<16x32xf32>
    %6 = vector.broadcast %4 : vector<1x32xf32> to vector<16x32xf32>
    %7 = arith.mulf %5, %6 : vector<16x32xf32>
    %8 = vector.extract_strided_slice %1 {offsets = [0, 1], sizes = [16, 1], strides = [1, 1]} : vector<16x2xf32> to vector<16x1xf32>
    %9 = vector.extract_strided_slice %2 {offsets = [1, 0], sizes = [1, 32], strides = [1, 1]} : vector<2x32xf32> to vector<1x32xf32>
    %10 = vector.broadcast %8 : vector<16x1xf32> to vector<16x32xf32>
    %11 = vector.broadcast %9 : vector<1x32xf32> to vector<16x32xf32>
    %12 = arith.mulf %10, %11 : vector<16x32xf32>
    %13 = arith.addf %7, %12 : vector<16x32xf32>
    %14 = arith.truncf %13 : vector<16x32xf32> to vector<16x32xbf16>
    %cst = arith.constant dense<0.000000e+00> : vector<16x32xf32>
    %15 = tpu.matmul %0, %14, %cst {dimension_numbers = #tpu.dot_dimension_numbers<[1], [0], [0], [1], [0, 0, 1, 1], [], []>} : vector<16x16xbf16>, vector<16x32xbf16>, vector<16x32xf32> -> vector<16x32xf32>
    %c0_5 = arith.constant 0 : index
    %c0_6 = arith.constant 0 : index
    %16 = vector.load %arg3[%c0_5, %c0_6] : memref<1x32xf32, #tpu.memory_space<vmem>>, vector<1x32xf32>
    %17 = vector.broadcast %16 : vector<1x32xf32> to vector<16x32xf32>
    %18 = arith.addf %15, %17 : vector<16x32xf32>
    %cst_7 = arith.constant 0.000000e+00 : f32
    %19 = vector.broadcast %cst_7 : f32 to vector<16x32xf32>
    %20 = arith.maximumf %18, %19 : vector<16x32xf32>
    %21 = arith.truncf %20 : vector<16x32xf32> to vector<16x32xbf16>
    %c0_8 = arith.constant 0 : index
    %c0_9 = arith.constant 0 : index
    %22 = vector.load %arg4[%c0_8, %c0_9] : memref<32x16xf32, #tpu.memory_space<vmem>>, vector<32x16xf32>
    %23 = arith.truncf %22 : vector<32x16xf32> to vector<32x16xbf16>
    %cst_10 = arith.constant dense<0.000000e+00> : vector<16x16xf32>
    %24 = tpu.matmul %21, %23, %cst_10 {dimension_numbers = #tpu.dot_dimension_numbers<[1], [0], [0], [1], [0, 0, 1, 1], [], []>} : vector<16x32xbf16>, vector<32x16xbf16>, vector<16x16xf32> -> vector<16x16xf32>
    %25 = arith.truncf %24 : vector<16x16xf32> to vector<16x16xbf16>
    %cst_11 = arith.constant dense<0.000000e+00> : vector<16x16xf32>
    %26 = tpu.matmul %0, %25, %cst_11 {dimension_numbers = #tpu.dot_dimension_numbers<[1], [0], [0], [1], [0, 0, 1, 1], [], []>} : vector<16x16xbf16>, vector<16x16xbf16>, vector<16x16xf32> -> vector<16x16xf32>
    %c0_12 = arith.constant 0 : index
    %c0_13 = arith.constant 0 : index
    %27 = vector.load %arg5[%c0_12, %c0_13] : memref<1x16xf32, #tpu.memory_space<vmem>>, vector<1x16xf32>
    %28 = vector.broadcast %27 : vector<1x16xf32> to vector<16x16xf32>
    %29 = arith.addf %26, %28 : vector<16x16xf32>
    %cst_14 = arith.constant 0.000000e+00 : f32
    %30 = vector.broadcast %cst_14 : f32 to vector<16x16xf32>
    %31 = arith.maximumf %29, %30 : vector<16x16xf32>
    %32 = arith.truncf %31 : vector<16x16xf32> to vector<16x16xbf16>
    %c0_15 = arith.constant 0 : index
    %c0_16 = arith.constant 0 : index
    %33 = vector.load %arg6[%c0_15, %c0_16] : memref<16x1xf32, #tpu.memory_space<vmem>>, vector<16x1xf32>
    %34 = arith.truncf %33 : vector<16x1xf32> to vector<16x1xbf16>
    %cst_17 = arith.constant dense<0.000000e+00> : vector<16x1xf32>
    %35 = tpu.matmul %32, %34, %cst_17 {dimension_numbers = #tpu.dot_dimension_numbers<[1], [0], [0], [1], [0, 0, 1, 1], [], []>} : vector<16x16xbf16>, vector<16x1xbf16>, vector<16x1xf32> -> vector<16x1xf32>
    %36 = arith.truncf %35 : vector<16x1xf32> to vector<16x1xbf16>
    %cst_18 = arith.constant dense<0.000000e+00> : vector<16x1xf32>
    %37 = tpu.matmul %0, %36, %cst_18 {dimension_numbers = #tpu.dot_dimension_numbers<[1], [0], [0], [1], [0, 0, 1, 1], [], []>} : vector<16x16xbf16>, vector<16x1xbf16>, vector<16x1xf32> -> vector<16x1xf32>
    %c0_19 = arith.constant 0 : index
    %c0_20 = arith.constant 0 : index
    %38 = vector.load %arg7[%c0_19, %c0_20] : memref<1x1xf32, #tpu.memory_space<vmem>>, vector<1x1xf32>
    %39 = vector.broadcast %38 : vector<1x1xf32> to vector<16x1xf32>
    %40 = arith.addf %37, %39 : vector<16x1xf32>
    %cst_21 = arith.constant dense<0xFF800000> : vector<1xf32>
    %41 = vector.multi_reduction <maximumf>, %40, %cst_21 [0] : vector<16x1xf32> to vector<1xf32>
    %42 = vector.shape_cast %41 : vector<1xf32> to vector<1x1xf32>
    %43 = vector.broadcast %42 : vector<1x1xf32> to vector<16x1xf32>
    %44 = arith.subf %40, %43 : vector<16x1xf32>
    %45 = math.exp %44 : vector<16x1xf32>
    %cst_22 = arith.constant dense<0.000000e+00> : vector<1xf32>
    %46 = vector.multi_reduction <add>, %45, %cst_22 [0] : vector<16x1xf32> to vector<1xf32>
    %47 = vector.shape_cast %46 : vector<1xf32> to vector<1x1xf32>
    %48 = vector.broadcast %47 : vector<1x1xf32> to vector<16x1xf32>
    %49 = arith.divf %45, %48 : vector<16x1xf32>
    %c0_23 = arith.constant 0 : index
    %c0_24 = arith.constant 0 : index
    %50 = vector.load %arg10[%c0_23, %c0_24] : memref<16x1xf32, #tpu.memory_space<vmem>>, vector<16x1xf32>
    tpu.vector_store %arg10[%c0_23, %c0_24], %49 {strides = array<i32>} : memref<16x1xf32, #tpu.memory_space<vmem>>, vector<16x1xf32>,
    %cst_25 = arith.constant dense<0.000000e+00> : vector<16xf32>
    %51 = vector.multi_reduction <add>, %31, %cst_25 [0] : vector<16x16xf32> to vector<16xf32>
    %52 = vector.shape_cast %51 : vector<16xf32> to vector<1x16xf32>
    %cst_26 = arith.constant 6.250000e-02 : f32
    %53 = vector.broadcast %cst_26 : f32 to vector<1x16xf32>
    %54 = arith.mulf %52, %53 : vector<1x16xf32>
    %c0_27 = arith.constant 0 : index
    %c0_28 = arith.constant 0 : index
    %55 = vector.load %arg8[%c0_27, %c0_28] : memref<1x16xf32, #tpu.memory_space<vmem>>, vector<1x16xf32>
    %56 = arith.mulf %54, %55 : vector<1x16xf32>
    %cst_29 = arith.constant dense<0.000000e+00> : vector<1xf32>
    %57 = vector.multi_reduction <add>, %56, %cst_29 [1] : vector<1x16xf32> to vector<1xf32>
    %58 = vector.shape_cast %57 : vector<1xf32> to vector<1x1xf32>
    %c0_30 = arith.constant 0 : index
    %c0_31 = arith.constant 0 : index
    %59 = vector.load %arg9[%c0_30, %c0_31] : memref<1x1xf32, #tpu.memory_space<vmem>>, vector<1x1xf32>
    %60 = arith.addf %58, %59 : vector<1x1xf32>
    %c0_32 = arith.constant 0 : index
    %c0_33 = arith.constant 0 : index
    %61 = vector.load %arg11[%c0_32, %c0_33] : memref<1x1xf32, #tpu.memory_space<vmem>>, vector<1x1xf32>
    tpu.vector_store %arg11[%c0_32, %c0_33], %60 {strides = array<i32>} : memref<1x1xf32, #tpu.memory_space<vmem>>, vector<1x1xf32>,
    return
  }
}

</mosaic_0001>

<bundles_post_ra>
// kernel: tpu_custom_call.1
= control target key start
LH: loop header
LB: loop body
LE: loop exit
PB: predicated region body
PF: predicated region fallthrough
CT: control target
= control target key end

     0   :  { %s649_s0 = inlined_call_operand.vmem [shape: bf16[16,16], index: 0, kind: input, shape index: {}]   ;;  %s650_s1 = inlined_call_operand.vmem [shape: f32[16,2], index: 1, kind: input, shape index: {}]   ;;  %s651_s2 = inlined_call_operand.vmem [shape: f32[2,32], index: 2, kind: input, shape index: {}]   ;;  %s652_s3 = inlined_call_operand.vmem [shape: f32[1,32], index: 3, kind: input, shape index: {}]   ;;  %s653_s4 = inlined_call_operand.vmem [shape: f32[32,16], index: 4, kind: input, shape index: {}]   ;;  %s654_s5 = inlined_call_operand.vmem [shape: f32[1,16], index: 5, kind: input, shape index: {}]   ;;  %s655_s6 = inlined_call_operand.vmem [shape: f32[16,1], index: 6, kind: input, shape index: {}]   ;;  %s656_s7 = inlined_call_operand.<no memory space> [shape: f32[1,1], index: 7, kind: input, shape index: {}]   ;;  %s657_s8 = inlined_call_operand.vmem [shape: f32[1,16], index: 8, kind: input, shape index: {}]   ;;  %s658_s10 = inlined_call_operand.vmem [shape: f32[16,1], index: 10, kind: output, shape index: {0}]   ;;  %s659_s11 = inlined_call_operand.hbm [shape: f32[1,1], index: 11, kind: output, shape index: {1}]   ;;  %s660_s9 = inlined_call_operand.<no memory space> [shape: f32[1,1], index: 9, kind: input, shape index: {}]  }
   0x1   :  { %v17_v0 = vstv %s656_s7  ;;  %v19_v1 = vstv %s660_s9 }
   0x2   :  { %18 = vst [vmem:[#allocation2] sm:$0x1] %v17_v0  ;;  %20 = vst [vmem:[#allocation3] sm:$0x1] %v19_v1 }
   0x3   :  { %v45_v2 = vld [vmem:[%s650_s1] sm:$0xff]  ;;  %v497_v3 = vmov 1   ;;  %v498_v4 = vmov 0  }
   0x4   :  { %466 = vset.pattern.permute.xlu1 %v497_v3  ;;  %465 = vset.pattern.permute.xlu0 %v498_v4 }
   0x5   :  { %21 = vsyncpa [#allocation5], 0  ;;  %65 = vperm.xlu1 %466, %v45_v2   ;;  %50 = vperm.xlu0 %465, %v45_v2   ;;  %v46_v5 = vld [vmem:[%s650_s1 + $0x8] sm:$0xff]  ;;  %v499_v6 = vmov 0.0   ;;  %vm500_vm0 = vmmov 0   ;;  %v58_v7 = vlaneseq  ;;  %v586_v25 = vld [vmem:[%s649_s0] sm:$0xff]  }
   0x6   :  { %428 = vmatprep.subr.bf16.mxu0 %v499_v6  ;;  %434 = vmatprep.subr.bf16.mxu1 %v499_v6  ;;  %v47_v11 = vld [vmem:[%s651_s2] sm:$0x3]  ;;  %vm93_vm1 = vcmask 130048   ;;  %v143_v26 = vld [vmem:[%s653_s4 + $0x10] sm:$0xff]  ;;  %v144_v27 = vld [vmem:[%s653_s4 + $0x18] sm:$0xff]  ;;  %vm147_vm2 = vcmask 261120  }
   0x7   :  { %430 = vmatprep.mubr.msk.bf16.mxu0 %vm500_vm0, %v499_v6  ;;  %438 = vmatprep.mubr.msk.bf16.mxu1 %vm500_vm0, %v499_v6  ;;  %v59_v8 = vshrl.u32 %v58_v7, 7  ;;  %v146_v28 = vpack.c.bf16 %v144_v27, %v143_v26  ;;  %v141_v29 = vld [vmem:[%s653_s4] sm:$0xff]  ;;  %v142_v30 = vld [vmem:[%s653_s4 + $0x8] sm:$0xff]  ;;  %vm382_vm3 = vcmask 122880   ;;  %vm388_vm4 = vcmask 0  }
   0x8   :  { %v145_v31 = vpack.c.bf16 %v142_v30, %v141_v29  ;;  %v408_v32 = vld [vmem:[%s652_s3] ss:$0 sm:$0xff]  ;;  %v245_v48 = vld [vmem:[%s655_s6 + $0x8] sm:$0xff] }
   0x9   :  { %69 = vperm.xlu1 %466, %v46_v5   ;;  %55 = vperm.xlu0 %465, %v46_v5   ;;  %v74_v9 = vsub.s32 1, %v59_v8  ;;  %v60_v10 = vsub.s32 0, %v59_v8  ;;  %v244_v47 = vld [vmem:[%s655_s6] sm:$0xff] }
   0xa   :  { %435 = vmatpush3.bf16.msra.mxu1 %v146_v28  ;;  %v246_v49 = vpack.c.bf16 %v245_v48, %v244_v47  ;;  %v412_v50 = vld [vmem:[%s654_s5] ss:$0 sm:$0xff] }
   0xb   :  { %v75_v12 = vrot.slane %v47_v11, %v74_v9  ;;  %v61_v13 = vrot.slane %v47_v11, %v60_v10  ;;  %436 = vmatprep.subr.bf16.mxu1 %v499_v6  ;;  %v380_v5 = vld [vmem:[%s657_s8] sm:$0x1]  ;;  %v386_v9 = vld [vmem:[#allocation3] sm:$0x1]  ;;  %s501_s8 = smov [#allocation4]  }
   0xc   :  { %s398_s19 = sshll.u32 %s501_s8, 4  ;;  %s399_s19 = int_to_ptr.vmem [resolvable:$true] %s398_s19 }
   0xd   :  { %467 = vset.pattern.permute.xlu0 %v497_v3  ;;  %s475_s20 = scalar_lea.vmem %s399_s19, 16  ;;  %s479_s21 = scalar_lea.vmem %s399_s19, 32 }
   0xe   :  { %437 = vmatpush3.bf16.msra.mxu1 %v145_v31  ;;  %p476_p0 = scmp.ne.s32.totalorder %s399_s19, %s475_s20  ;;  %p480_p1 = scmp.lt.s32.totalorder %s399_s19, %s399_s19 }
   0xf   :  { %448 = vmatprep.subr.bf16.mxu1 %v499_v6  ;;  %p481_p2 = scmp.lt.s32.totalorder %s479_s21, %s475_s20 }
  0x11   :  { %p482_p3 = por %p481_p2, %p480_p1 }
  0x13   :  { %p483_p4 = pnand %p482_p3, %p476_p0 }
  0x80   :  { %v66_v14 = vpop.permute.xlu1 %65  ;;  %v51_v15 = vpop.permute.xlu0 %50 }
  0x81   :  { %v76_v16 = vmul.f32 %v75_v12, %v66_v14  ;;  %v62_v17 = vmul.f32 %v61_v13, %v51_v15 }
  0x83   :  { %v78_v22 = vadd.f32 %v76_v16, %v62_v17 }
  0x84   :  { %v70_v18 = vpop.permute.xlu1 %69  ;;  %v56_v19 = vpop.permute.xlu0 %55 }
  0x85   :  { %v77_v20 = vmul.f32 %v75_v12, %v70_v18  ;;  %v63_v21 = vmul.f32 %v61_v13, %v56_v19 }
  0x87   :  { %v79_v23 = vadd.f32 %v77_v20, %v63_v21 }
  0x89   :  { %v80_v24 = vpack.c.bf16 %v79_v23, %v78_v22 }
  0x8b   :  { %429 = vmatpush3.bf16.msra.mxu0 %v80_v24 }
  0x8c   :  { %442 = vmatprep.subr.bf16.mxu0 %v499_v6 }
  0x8e   :  { %431 = vmatmul.mubr.msk.bf16.vlgmr.msra.gmra.mxu0 %vm93_vm1, %v586_v25 }
  0x8f   :  { %444 = vmatprep.mubr.msk.bf16.mxu0 %vm500_vm0, %v499_v6 }
 0x14e   :  { %v131_v33 = vpop.f32.mrf.mxu0 }
 0x14f   :  { %v132_v35 = vadd.f32 %v408_v32, %v131_v33 }
 0x150   :  { %v432_v34 = vpop.f32.mrf.mxu0 }
 0x151   :  { %v138_v39 = vmax.f32 %v132_v35, 0.0 }
 0x152   :  { %v134_v36 = vpop.f32.mrf.mxu0 }
 0x153   :  { %v135_v37 = vadd.f32 %v408_v32, %v134_v36 }
 0x154   :  { %v433_v38 = vpop.f32.mrf.mxu0 }
 0x155   :  { %v139_v40 = vmax.f32 %v135_v37, 0.0 }
 0x157   :  { %v140_v41 = vpack.c.bf16 %v139_v40, %v138_v39 }
 0x159   :  { %439 = vmatmul.mubr.msk.bf16.vlgmr.msra.gmra.mxu1 %vm147_vm2, %v140_v41 }
 0x15a   :  { %450 = vmatprep.mubr.msk.bf16.mxu1 %vm500_vm0, %v499_v6  ;;  %449 = vmatpush3.bf16.msra.mxu1 %v246_v49 }
 0x219   :  { %v185_v42 = vpop.f32.mrf.mxu1 }
 0x21b   :  { %v440_v43 = vpop.f32.mrf.mxu1 }
 0x21d   :  { %v188_v44 = vpop.f32.mrf.mxu1 }
 0x21e   :  { %v192_v45 = vpack.c.bf16 %v188_v44, %v185_v42 }
 0x21f   :  { %v441_v46 = vpop.f32.mrf.mxu1 }
 0x220   :  { %443 = vmatpush3.bf16.msra.mxu0 %v192_v45 }
 0x221   :  { %454 = vmatprep.subr.bf16.mxu0 %v499_v6 }
 0x223   :  { %445 = vmatmul.mubr.msk.bf16.vlgmr.msra.gmra.mxu0 %vm93_vm1, %v586_v25 }
 0x224   :  { %456 = vmatprep.mubr.msk.bf16.mxu0 %vm500_vm0, %v499_v6 }
 0x2e3   :  { %v234_v51 = vpop.f32.mrf.mxu0 }
 0x2e4   :  { %v235_v52 = vadd.f32 %v412_v50, %v234_v51 }
 0x2e5   :  { %v446_v53 = vpop.f32.mrf.mxu0 }
 0x2e6   :  { %v241_v55 = vmax.f32 %v235_v52, 0.0 }
 0x2e7   :  { %v237_v54 = vpop.f32.mrf.mxu0 }
 0x2e8   :  { %v238_v56 = vadd.f32 %v412_v50, %v237_v54  ;;  %v370_v59 = vsel %vm93_vm1, %v241_v55, 0.0 }
 0x2e9   :  { %v447_v57 = vpop.f32.mrf.mxu0 }
 0x2ea   :  { %v242_v58 = vmax.f32 %v238_v56, 0.0 }
 0x2ec   :  { %v243_v60 = vpack.c.bf16 %v242_v58, %v241_v55  ;;  %v371_v61 = vsel %vm93_vm1, %v242_v58, 0.0 }
 0x2ed   :  { %v372_v62 = vadd.f32 %v371_v61, %v370_v59 }
 0x2ee   :  { %451 = vmatmul.mubr.msk.bf16.vlgmr.msra.gmra.mxu1 %vm93_vm1, %v243_v60 }
 0x2ef   :  { %v373_v63 = vrot.slane %v372_v62, 4 }
 0x2f1   :  { %v374_v0 = vadd.f32 %v373_v63, %v372_v62 }
 0x2f3   :  { %v375_v1 = vrot.slane %v374_v0, 2 }
 0x2f5   :  { %v376_v2 = vadd.f32 %v375_v1, %v374_v0 }
 0x2f7   :  { %v377_v3 = vrot.slane %v376_v2, 1 }
 0x2f9   :  { %v378_v4 = vadd.f32 %v377_v3, %v376_v2 }
 0x2fb   :  { %v379_v6 = vmul.f32 0.0625, %v378_v4 }
 0x2fd   :  { %v381_v7 = vmul.f32 %v380_v5, %v379_v6 }
 0x2ff   :  { %v383_v8 = vsel %vm382_vm3, %v381_v7, 0.0 }
 0x300   :  { %384 = vadd.xlane.f32.xlu0 %v383_v8 }
 0x389   :  { %v385_v10 = vpop.xlane.xlu0 %384 }
 0x38a   :  { %v387_v11 = vadd.f32 %v386_v9, %v385_v10 }
 0x38c   :  { %389 = vst.msk [vmem:[#allocation4] sm:$0x1] %vm388_vm4, %v387_v11 }
 0x3ae   :  { %v284_v12 = vpop.f32.mrf.mxu1 }
 0x3b0   :  { %v452_v13 = vpop.f32.mrf.mxu1 }
 0x3b2   :  { %v287_v14 = vpop.f32.mrf.mxu1 }
 0x3b3   :  { %v291_v15 = vpack.c.bf16 %v287_v14, %v284_v12 }
 0x3b4   :  { %v453_v16 = vpop.f32.mrf.mxu1 }
 0x3b5   :  { %455 = vmatpush3.bf16.msra.mxu0 %v291_v15 }
 0x3b8   :  { %457 = vmatmul.mubr.msk.bf16.vlgmr.msra.gmra.mxu0 %vm93_vm1, %v586_v25 }
 0x3b9   :  { %486 = shalt.err (!%p483_p4)
}
 0x3ba   :  { %401 = dma.vmem_to_hbm [thread:$0]  %s399_s19, 16, %s659_s11, [#allocation5]   ;;  %v415_v17 = vld [vmem:[#allocation2] ss:$0 sm:$0xff]  ;;  %vm340_vm5 = vcmask 7168  }
 0x478   :  { %v333_v18 = vpop.f32.mrf.mxu0 }
 0x479   :  { %v334_v20 = vadd.f32 %v415_v17, %v333_v18 }
 0x47a   :  { %v458_v19 = vpop.f32.mrf.mxu0 }
 0x47b   :  { %v341_v24 = vsel %vm340_vm5, %v334_v20, -inf }
 0x47c   :  { %v336_v21 = vpop.f32.mrf.mxu0 }
 0x47d   :  { %v337_v22 = vadd.f32 %v415_v17, %v336_v21 }
 0x47e   :  { %v459_v23 = vpop.f32.mrf.mxu0 }
 0x47f   :  { %v342_v25 = vsel %vm340_vm5, %v337_v22, -inf }
 0x480   :  { %v343_v26 = vmax.f32 %v341_v24, %v342_v25 }
 0x482   :  { %v344_v27 = vrot.slane %v343_v26, 4 }
 0x484   :  { %v345_v28 = vmax.f32 %v343_v26, %v344_v27 }
 0x486   :  { %v346_v29 = vrot.slane %v345_v28, 2 }
 0x488   :  { %v347_v30 = vmax.f32 %v345_v28, %v346_v29 }
 0x48a   :  { %v348_v31 = vrot.slane %v347_v30, 1 }
 0x48c   :  { %v349_v32 = vmax.f32 %v347_v30, %v348_v31 }
 0x48e   :  { %v350_v33 = vsub.f32 %v334_v20, %v349_v32  ;;  %v351_v34 = vsub.f32 %v337_v22, %v349_v32 }
 0x490   :  { %v352_v35 = vmul.f32 1.442695, %v350_v33  ;;  %v354_v36 = vmul.f32 1.442695, %v351_v34 }
 0x492   :  { %469 = vpow2.f32 %v352_v35 }
 0x493   :  { %471 = vpow2.f32 %v354_v36 }
 0x49f   :  { %v470_v37 = vpop.eup %469 }
 0x4a0   :  { %v472_v38 = vpop.eup %471  ;;  %v356_v39 = vsel %vm340_vm5, %v470_v37, 0.0 }
 0x4a1   :  { %v357_v40 = vsel %vm340_vm5, %v472_v38, 0.0 }
 0x4a2   :  { %v358_v41 = vadd.f32 %v357_v40, %v356_v39 }
 0x4a4   :  { %v359_v42 = vrot.slane %v358_v41, 4 }
 0x4a6   :  { %v360_v43 = vadd.f32 %v359_v42, %v358_v41 }
 0x4a8   :  { %v361_v44 = vrot.slane %v360_v43, 2 }
 0x4aa   :  { %v362_v45 = vadd.f32 %v361_v44, %v360_v43 }
 0x4ac   :  { %v363_v46 = vrot.slane %v362_v45, 1 }
 0x4ae   :  { %v364_v47 = vadd.f32 %v363_v46, %v362_v45 }
 0x4b0   :  { %473 = vrcp.f32 %v364_v47 }
 0x4bd   :  { %v474_v48 = vpop.eup %473 }
 0x4be   :  { %v366_v49 = vmul.f32 %v474_v48, %v470_v37  ;;  %v367_v50 = vmul.f32 %v474_v48, %v472_v38 }
 0x4c0   :  { %368 = vst.msk [vmem:[%s658_s10] sm:$0xff] %vm340_vm5, %v366_v49  ;;  %369 = vst.msk [vmem:[%s658_s10 + $0x8] sm:$0xff] %vm340_vm5, %v367_v50 }
 0x4c1   :  { %495 = dma.done.wait [#allocation5], 16  }
 0x4c2   :  { %496 = vsyncadd [#allocation5], 4294967280 }
 0x4c3   :  { %407 = vsyncpa [#allocation5], 1 }

</bundles_post_ra>
